<compile_context>
chip_gen: v7x
topology: tpu7x:2x2x1
jax: 0.10.0
libtpu: 0.0.40
codegen_flags: <defaults>
</compile_context>

<pallas_src>
import jax
import jax.numpy as jnp
from jax.experimental import pallas as pl
from jax.experimental.pallas import tpu as pltpu

# Module hyper-parameters (INPUT_DIM == HEAD * HEAD_DIM)
HEAD = 4
HEAD_DIM = 8
D_MODEL = HEAD * HEAD_DIM        # 32
DENSE_FF = 64
LN_EPS = 1e-5                    # PyTorch nn.LayerNorm default eps


def ffn_kernel(x_ref, w1_ref, w2_ref, b1_ref, b2_ref, out_ref):
    # One grid step processes a (tile_n, D) slab of flattened (B*T, D) tokens.
    x = x_ref[...]                                     # (tile_n, D) f32

    # --- LayerNorm statistics in one pass (biased variance, like torch) ---
    mean = jnp.mean(x, axis=-1, keepdims=True)
    mean_sq = jnp.mean(x * x, axis=-1, keepdims=True)
    var = mean_sq - mean * mean
    xn = (x - mean) * jax.lax.rsqrt(var + LN_EPS)
    # LN affine (gamma, beta) is folded into W1/b1 at init time.

    # --- w_1 -> ReLU -> (dropout = identity) -> w_2 -> (dropout2 = identity) ---
    # bf16 operands, f32 MXU accumulation.
    h = jnp.dot(xn.astype(jnp.bfloat16), w1_ref[...],
                preferred_element_type=jnp.float32) + b1_ref[...]
    h = jnp.maximum(h, 0.0)                            # ReLU
    y = jnp.dot(h.astype(jnp.bfloat16), w2_ref[...],
                preferred_element_type=jnp.float32) + b2_ref[...]

    out_ref[...] = y + x                               # residual (pre-LN input)


def _round_up(n, m):
    return ((n + m - 1) // m) * m


def _choose_tile(N, max_tile_rows):
    """Pick a row tile that is a multiple of 8, gives >=2 grid steps when possible
    (v7x 2-TC sharding), and preferably divides N exactly (no masked epilogue)."""
    if N < 16:
        return N                              # single full-extent tile
    target = min(max_tile_rows, _round_up(pl.cdiv(N, 2), 8))
    cand = (target // 8) * 8
    while cand >= 8:
        if N % cand == 0:
            return cand
        cand -= 8
    return (target // 8) * 8                  # fallback: masked trailing block (still correct)


def positionwise_feed_forward(x, params, *, max_tile_rows=8192):
    """x: (B, T, D) float32 -> (B, T, D) float32."""
    B, T, D = x.shape
    N = B * T
    x2 = x.reshape(N, D)

    tile_n = _choose_tile(N, max_tile_rows)
    grid = (pl.cdiv(N, tile_n),)

    shared = lambda shape: pl.BlockSpec(shape, lambda i: (0, 0))

    out2 = pl.pallas_call(
        ffn_kernel,
        out_shape=jax.ShapeDtypeStruct((N, D), jnp.float32),
        grid=grid,
        in_specs=[
            pl.BlockSpec((tile_n, D), lambda i: (i, 0)),   # x  (row-tiled)
            shared((D, DENSE_FF)),                         # w1  (bf16, LN-affine folded)
            shared((DENSE_FF, D)),                         # w2  (bf16)
            shared((1, DENSE_FF)),                         # b1' (f32)
            shared((1, D)),                                # b2  (f32)
        ],
        out_specs=pl.BlockSpec((tile_n, D), lambda i: (i, 0)),
        input_output_aliases={0: 0},                       # reuse x2's HBM buffer
        compiler_params=pltpu.CompilerParams(
            dimension_semantics=("parallel",),
            vmem_limit_bytes=32 * 1024 * 1024,             # > v5e's 16 MiB default
        ),
    )(x2, params["w1"], params["w2"], params["b1"], params["b2"])

    return out2.reshape(B, T, D)


def init_params(key):
    ks = jax.random.split(key, 4)
    s = 0.1
    D = D_MODEL
    # nn.LayerNorm default init: weight=1, bias=0
    ln_g = jnp.ones((D,), jnp.float32)
    ln_b = jnp.zeros((D,), jnp.float32)
    w1 = s * jax.random.normal(ks[0], (D, DENSE_FF), jnp.float32)
    b1 = s * jax.random.normal(ks[1], (1, DENSE_FF), jnp.float32)
    w2 = s * jax.random.normal(ks[2], (DENSE_FF, D), jnp.float32)
    b2 = s * jax.random.normal(ks[3], (1, D), jnp.float32)

    # One-time fold of the LayerNorm affine into the first linear
    # (exact in eval mode, up to FP reassociation):
    #   (xn * gamma + beta) @ W1 + b1 == xn @ (diag(gamma) @ W1) + (beta @ W1 + b1)
    w1_folded = ln_g[:, None] * w1
    b1_folded = ln_b[None, :] @ w1 + b1

    return {
        "w1": w1_folded.astype(jnp.bfloat16),   # bf16 MXU operands
        "w2": w2.astype(jnp.bfloat16),
        "b1": b1_folded,                        # f32, added after f32 accumulation
        "b2": b2,
        # f32 originals for the pure-JAX reference check
        "_ref": {"w1": w1, "b1": b1, "w2": w2, "b2": b2, "ln_g": ln_g, "ln_b": ln_b},
    }


def reference(x, params):
    """Pure-JAX f32 reference matching the PyTorch module in eval mode."""
    r = params["_ref"]
    mean = jnp.mean(x, axis=-1, keepdims=True)
    var = jnp.mean((x - mean) ** 2, axis=-1, keepdims=True)
    xn = (x - mean) / jnp.sqrt(var + LN_EPS)
    xn = xn * r["ln_g"] + r["ln_b"]
    h = jnp.maximum(xn @ r["w1"] + r["b1"], 0.0)
    y = h @ r["w2"] + r["b2"]
    return y + x


if __name__ == "__main__":
    B, T = 2, 8
    key = jax.random.PRNGKey(0)
    k_x, k_params = jax.random.split(key)

    x = jax.random.normal(k_x, (B, T, D_MODEL), jnp.float32)
    params = init_params(k_params)

    ffn = jax.jit(positionwise_feed_forward)
    out = ffn(x, params)
    jax.block_until_ready(out)
    assert out.shape == (B, T, D_MODEL)

    ref = reference(x, params)
    max_err = float(jnp.max(jnp.abs(out - ref)))
    assert jnp.allclose(out, ref, atol=3e-2, rtol=3e-2), max_err

    # TODO(synk): nn.Dropout is stochastic in train mode; this kernel implements
    # eval-mode (identity) dropout only.
    print("KERNEL_OK")
</pallas_src>

<mosaic_0001>
module attributes {stable_mosaic.version = 11 : i64} {
  func.func @ffn_kernel(%arg0: i32, %arg1: memref<8x32xf32, #tpu.memory_space<vmem>>, %arg2: memref<32x64xbf16, #tpu.memory_space<vmem>>, %arg3: memref<64x32xbf16, #tpu.memory_space<vmem>>, %arg4: memref<1x64xf32, #tpu.memory_space<vmem>>, %arg5: memref<1x32xf32, #tpu.memory_space<vmem>>, %arg6: memref<8x32xf32, #tpu.memory_space<vmem>>) attributes {dimension_semantics = [#tpu.dimension_semantics<parallel>], iteration_bounds = array<i64: 2>, scalar_prefetch = 0 : i64, scratch_operands = 0 : i64, tpu.core_type = #tpu.core_type<tc>, window_params = [{transform_indices = @transform_0, window_bounds = array<i64: 8, 32>}, {pipeline_mode = #tpu.pipeline_mode<synchronous>, transform_indices = @transform_1, window_bounds = array<i64: 32, 64>}, {pipeline_mode = #tpu.pipeline_mode<synchronous>, transform_indices = @transform_2, window_bounds = array<i64: 64, 32>}, {pipeline_mode = #tpu.pipeline_mode<synchronous>, transform_indices = @transform_3, window_bounds = array<i64: 1, 64>}, {pipeline_mode = #tpu.pipeline_mode<synchronous>, transform_indices = @transform_4, window_bounds = array<i64: 1, 32>}, {transform_indices = @transform_5, window_bounds = array<i64: 8, 32>}]} {
    %c0 = arith.constant 0 : index
    %c0_0 = arith.constant 0 : index
    %0 = vector.load %arg1[%c0, %c0_0] : memref<8x32xf32, #tpu.memory_space<vmem>>, vector<8x32xf32>
    %cst = arith.constant dense<0.000000e+00> : vector<8xf32>
    %1 = vector.multi_reduction <add>, %0, %cst [1] : vector<8x32xf32> to vector<8xf32>
    %2 = vector.shape_cast %1 : vector<8xf32> to vector<8x1xf32>
    %cst_1 = arith.constant 3.200000e+01 : f32
    %3 = vector.broadcast %cst_1 : f32 to vector<8x1xf32>
    %4 = arith.divf %2, %3 : vector<8x1xf32>
    %5 = arith.mulf %0, %0 : vector<8x32xf32>
    %cst_2 = arith.constant dense<0.000000e+00> : vector<8xf32>
    %6 = vector.multi_reduction <add>, %5, %cst_2 [1] : vector<8x32xf32> to vector<8xf32>
    %7 = vector.shape_cast %6 : vector<8xf32> to vector<8x1xf32>
    %cst_3 = arith.constant 3.200000e+01 : f32
    %8 = vector.broadcast %cst_3 : f32 to vector<8x1xf32>
    %9 = arith.divf %7, %8 : vector<8x1xf32>
    %10 = arith.mulf %4, %4 : vector<8x1xf32>
    %11 = arith.subf %9, %10 : vector<8x1xf32>
    %12 = vector.broadcast %4 : vector<8x1xf32> to vector<8x32xf32>
    %13 = arith.subf %0, %12 : vector<8x32xf32>
    %cst_4 = arith.constant 9.99999974E-6 : f32
    %14 = vector.broadcast %cst_4 : f32 to vector<8x1xf32>
    %15 = arith.addf %11, %14 : vector<8x1xf32>
    %16 = math.rsqrt %15 : vector<8x1xf32>
    %17 = vector.broadcast %16 : vector<8x1xf32> to vector<8x32xf32>
    %18 = arith.mulf %13, %17 : vector<8x32xf32>
    %19 = arith.truncf %18 : vector<8x32xf32> to vector<8x32xbf16>
    %c0_5 = arith.constant 0 : index
    %c0_6 = arith.constant 0 : index
    %20 = vector.load %arg2[%c0_5, %c0_6] : memref<32x64xbf16, #tpu.memory_space<vmem>>, vector<32x64xbf16>
    %cst_7 = arith.constant dense<0.000000e+00> : vector<8x64xf32>
    %21 = tpu.matmul %19, %20, %cst_7 {dimension_numbers = #tpu.dot_dimension_numbers<[1], [0], [0], [1], [0, 0, 1, 1], [], []>} : vector<8x32xbf16>, vector<32x64xbf16>, vector<8x64xf32> -> vector<8x64xf32>
    %c0_8 = arith.constant 0 : index
    %c0_9 = arith.constant 0 : index
    %22 = vector.load %arg4[%c0_8, %c0_9] : memref<1x64xf32, #tpu.memory_space<vmem>>, vector<1x64xf32>
    %23 = vector.broadcast %22 : vector<1x64xf32> to vector<8x64xf32>
    %24 = arith.addf %21, %23 : vector<8x64xf32>
    %cst_10 = arith.constant 0.000000e+00 : f32
    %25 = vector.broadcast %cst_10 : f32 to vector<8x64xf32>
    %26 = arith.maximumf %24, %25 : vector<8x64xf32>
    %27 = arith.truncf %26 : vector<8x64xf32> to vector<8x64xbf16>
    %c0_11 = arith.constant 0 : index
    %c0_12 = arith.constant 0 : index
    %28 = vector.load %arg3[%c0_11, %c0_12] : memref<64x32xbf16, #tpu.memory_space<vmem>>, vector<64x32xbf16>
    %cst_13 = arith.constant dense<0.000000e+00> : vector<8x32xf32>
    %29 = tpu.matmul %27, %28, %cst_13 {dimension_numbers = #tpu.dot_dimension_numbers<[1], [0], [0], [1], [0, 0, 1, 1], [], []>} : vector<8x64xbf16>, vector<64x32xbf16>, vector<8x32xf32> -> vector<8x32xf32>
    %c0_14 = arith.constant 0 : index
    %c0_15 = arith.constant 0 : index
    %30 = vector.load %arg5[%c0_14, %c0_15] : memref<1x32xf32, #tpu.memory_space<vmem>>, vector<1x32xf32>
    %31 = vector.broadcast %30 : vector<1x32xf32> to vector<8x32xf32>
    %32 = arith.addf %29, %31 : vector<8x32xf32>
    %33 = arith.addf %32, %0 : vector<8x32xf32>
    %c0_16 = arith.constant 0 : index
    %c0_17 = arith.constant 0 : index
    %34 = vector.load %arg6[%c0_16, %c0_17] : memref<8x32xf32, #tpu.memory_space<vmem>>, vector<8x32xf32>
    tpu.vector_store %arg6[%c0_16, %c0_17], %33 {strides = array<i32>} : memref<8x32xf32, #tpu.memory_space<vmem>>, vector<8x32xf32>,
    return
  }
  func.func @transform_0(%arg0: i32) -> (i32, i32) {
    %c0_i32 = arith.constant 0 : i32
    %c0_i32_0 = arith.constant 0 : i32
    return %arg0, %c0_i32 : i32, i32
  }
  func.func @transform_1(%arg0: i32) -> (i32, i32) {
    %c0_i32 = arith.constant 0 : i32
    %c0_i32_0 = arith.constant 0 : i32
    %c0_i32_1 = arith.constant 0 : i32
    return %c0_i32, %c0_i32_0 : i32, i32
  }
  func.func @transform_2(%arg0: i32) -> (i32, i32) {
    %c0_i32 = arith.constant 0 : i32
    %c0_i32_0 = arith.constant 0 : i32
    %c0_i32_1 = arith.constant 0 : i32
    return %c0_i32, %c0_i32_0 : i32, i32
  }
  func.func @transform_3(%arg0: i32) -> (i32, i32) {
    %c0_i32 = arith.constant 0 : i32
    %c0_i32_0 = arith.constant 0 : i32
    %c0_i32_1 = arith.constant 0 : i32
    return %c0_i32, %c0_i32_0 : i32, i32
  }
  func.func @transform_4(%arg0: i32) -> (i32, i32) {
    %c0_i32 = arith.constant 0 : i32
    %c0_i32_0 = arith.constant 0 : i32
    %c0_i32_1 = arith.constant 0 : i32
    return %c0_i32, %c0_i32_0 : i32, i32
  }
  func.func @transform_5(%arg0: i32) -> (i32, i32) {
    %c0_i32 = arith.constant 0 : i32
    %c0_i32_0 = arith.constant 0 : i32
    return %arg0, %c0_i32 : i32, i32
  }
}

</mosaic_0001>

<bundles_post_ra>
// kernel: positionwise_feed_forward.1
= control target key start
LH: loop header
LB: loop body
LE: loop exit
PB: predicated region body
PF: predicated region fallthrough
CT: control target
= control target key end

     0   :  { %s551_s18 = smov 0   ;;  %s603_s0 = inlined_call_operand.vmem [shape: f32[16,32], index: 0, kind: input, shape index: {}, may-alias: {0,5}]   ;;  %s604_s1 = inlined_call_operand.vmem [shape: bf16[32,64], index: 1, kind: input, shape index: {}]   ;;  %s605_s2 = inlined_call_operand.vmem [shape: bf16[64,32], index: 2, kind: input, shape index: {}]   ;;  %s606_s3 = inlined_call_operand.vmem [shape: f32[1,64], index: 3, kind: input, shape index: {}]   ;;  %s607_s4 = inlined_call_operand.vmem [shape: f32[1,32], index: 4, kind: input, shape index: {}]   ;;  %s608_s5 = inlined_call_operand.vmem [shape: f32[16,32], index: 5, kind: output, shape index: {}, may-alias: {0,5}]  }
   0x1 LB: > { %s446_s19 = sadd.s32 4294967295, %s517_s18   ;;  %p450_p0 = scmp.ge.s32.totalorder %s517_s18, 1  ;;  %s517_s18 = sphi %s551_s18, %s15_s18  }
   0x2   : > { %p186_p1 = scmp.lt.s32.totalorder %s517_s18, 3 }
   0x4   : > { %p187_p2 = pnand %p450_p0, %p186_p1 }
   0x5   : > { %p212_p3 = scmp.lt.s32.totalorder (!%p187_p2), %s446_s19, 1  ;;  %vm222_vm0 = vcmask (!%p187_p2), 261120   ;;  %v503_v4 = vld [vmem:[%s604_s1] sm:$0xff] (!%p187_p2)   ;;  %v519_v5 = vmov (!%p187_p2), 0.0   ;;  %vm520_vm1 = vmmov (!%p187_p2), 0   ;;  %v504_v6 = vld [vmem:[%s604_s1 + $0x8] sm:$0xff] (!%p187_p2)  }
   0x6   : > { %190 = sbr.rel (%p187_p2) target bundleno = 620 (0x26c), region = 40  ;;  %473 = vmatprep.subr.bf16.mxu0 (!%p187_p2), %v519_v5  ;;  %477 = vmatprep.mubr.msk.bf16.mxu0 (!%p187_p2), %vm520_vm1, %v519_v5  ;;  %v505_v7 = vld [vmem:[%s605_s2] sm:$0xff] (!%p187_p2)   ;;  %v506_v8 = vld [vmem:[%s605_s2 + $0x8] sm:$0xff] (!%p187_p2)   ;;  %v507_v20 = vld [vmem:[%s605_s2 + $0x10] sm:$0xff] (!%p187_p2)   ;;  %vm347_vm2 = vcmask (!%p187_p2), 523264  }
   0x7   : > { %474 = vmatpush3.bf16.msra.mxu0 (!%p187_p2), %v503_v4  ;;  %481 = vmatprep.subr.bf16.mxu1 (!%p187_p2), %v519_v5  ;;  %v508_v21 = vld [vmem:[%s605_s2 + $0x18] sm:$0xff] (!%p187_p2)   ;;  %v453_v22 = vld [vmem:[%s606_s3] ss:$0 sm:$0xff] (!%p187_p2) }
   0x8   : > { %475 = vmatprep.subr.bf16.mxu0 (!%p187_p2), %v519_v5  ;;  %489 = vmatprep.mubr.msk.bf16.mxu1 (!%p187_p2), %vm520_vm1, %v519_v5  ;;  %v457_v30 = vld [vmem:[%s607_s4] ss:$0 sm:$0xff] (!%p187_p2) }
   0x9   : > { %482 = vmatpush3.bf16.msra.mxu1 (!%p187_p2), %v505_v7 }
   0xa   : > { %483 = vmatprep.subr.bf16.mxu1 (!%p187_p2), %v519_v5 }
   0xb   : > { %476 = vmatpush3.bf16.msra.mxu0 (!%p187_p2), %v504_v6 }
   0xd   : > { %s610_s19 = smov (!%p212_p3, %s446_s19), 1  ;;  %484 = vmatpush3.bf16.msra.mxu1 %v506_v8 }
   0xe   : > { %s451_s20 = sshll.u32 %s610_s19, 3  ;;  %485 = vmatprep.subr.bf16.mxu1 %v519_v5 }
   0xf   : > { %s215_s23 = scalar_lea.vmem %s603_s0, %s451_s20  ;;  %s219_s17 = scalar_lea.vmem %s608_s5, %s451_s20 }
  0x10   : > { %v221_v0 = vld [vmem:[%s215_s23] sm:$0xff] }
  0x11   : > { %v223_v1 = vsel %vm222_vm0, %v221_v0, 0.0  ;;  %v228_v2 = vmul.f32 %v221_v0, %v221_v0  ;;  %486 = vmatpush3.bf16.msra.mxu1 %v507_v20 }
  0x12   : > { %224 = vadd.xlane.f32.xlu0 %v223_v1  ;;  %487 = vmatprep.subr.bf16.mxu1 %v519_v5 }
  0x13   : > { %v229_v3 = vsel %vm222_vm0, %v228_v2, 0.0 }
  0x15   : > { %488 = vmatpush3.bf16.msra.mxu1 %v508_v21 }
  0x16   : > { %230 = vadd.xlane.f32.xlu0 %v229_v3 }
  0x9f   : > { %v225_v9 = vpop.xlane.xlu0 %224 }
  0xa0   : > { %v227_v10 = vmul.f32 0.03125, %v225_v9 }
  0xa2   : > { %v233_v12 = vmul.f32 %v227_v10, %v227_v10  ;;  %v235_v16 = vsub.f32 %v221_v0, %v227_v10 }
  0xa3   : > { %v231_v11 = vpop.xlane.xlu0 %230 }
  0xa4   : > { %v232_v13 = vmul.f32 0.03125, %v231_v11 }
  0xa6   : > { %v234_v14 = vsub.f32 %v232_v13, %v233_v12 }
  0xa8   : > { %v236_v15 = vadd.f32 1e-05, %v234_v14 }
  0xaa   : > { %509 = vrsqrt.f32 %v236_v15 }
  0xb4   : > { %v510_v17 = vpop.eup %509 }
  0xb5   : > { %v238_v18 = vmul.f32 %v510_v17, %v235_v16 }
  0xb7   : > { %v239_v19 = vpack.c.bf16 %v238_v18, %v238_v18 }
  0xb9   : > { %478 = vmatmul.mubr.msk.bf16.vlgmr.msra.gmra.mrb[0].mxu0 %vm222_vm0, %v239_v19 }
 0x18c   : > { %v300_v23 = vpop.f32.mrb[0].mxu0 }
 0x18d   : > { %v301_v24 = vadd.f32 %v453_v22, %v300_v23  ;;  %v479_v25 = vpop.f32.mrb[1].mxu0 }
 0x18e   : > { %v303_v26 = vpop.f32.mrb[2].mxu0 }
 0x18f   : > { %v306_v27 = vmax.f32 %v301_v24, 0.0  ;;  %v480_v28 = vpop.f32.mrb[3].mxu0 }
 0x191   : > { %v307_v29 = vpack.c.bf16 %v306_v27, %v306_v27 }
 0x193   : > { %490 = vmatmul.mubr.msk.bf16.vlgmr.msra.gmra.mrb[0].mxu1 %vm347_vm2, %v307_v29 }
 0x266   : > { %v385_v31 = vpop.f32.mrb[0].mxu1 }
 0x267   : > { %v386_v32 = vadd.f32 %v457_v30, %v385_v31  ;;  %v491_v33 = vpop.f32.mrb[1].mxu1 }
 0x268   : > { %v388_v34 = vpop.f32.mrb[2].mxu1 }
 0x269   : > { %v391_v35 = vadd.f32 %v386_v32, %v221_v0  ;;  %v492_v36 = vpop.f32.mrb[3].mxu1 }
 0x26b   : > { %392 = vst.msk [vmem:[%s219_s17] sm:$0xff] %vm222_vm0, %v391_v35 }
 0x26c PF: > { %s15_s18 = sadd.s32 1, %s517_s18  }
 0x26d   : > { %p12_p4 = scmp.ge.s32.totalorder %s15_s18, 4  }
 0x26f   :  { %14 = sbr.rel (!%p12_p4) target bundleno = 1 (0x1), region = 70 }

</bundles_post_ra>
